<compile_context>
chip_gen: v7x
topology: tpu7x:2x2x1
jax: 0.10.0
libtpu: 0.0.40
codegen_flags: <defaults>
</compile_context>

<pallas_src>
import functools

import jax
import jax.numpy as jnp
import numpy as np
from jax import lax
from jax.experimental import pallas as pl
from jax.experimental.pallas import tpu as pltpu


def _smooth_l1_kernel(feat_ref, target_ref, inds_ref, mask_ref,
                      num_ref, den_ref, acc_ref, *, hw, hw_tile, c_real):
    # feat_ref   : VMEM (1, C, hw_tile) f32  -- slab of the (B, C, HW) feature map
    # target_ref : VMEM (1, C, Kp)      f32  -- target transposed to K-last (lane dim)
    # inds_ref   : VMEM (1, 1, Kp)      i32  -- gather indices into HW (padded lanes = 0)
    # mask_ref   : VMEM (1, 1, Kp)      f32  -- 0/1 mask (padded lanes = 0)
    # num_ref    : VMEM (1, 1, 1)       f32  -- per-batch smooth-L1 sum      (output)
    # den_ref    : VMEM (1, 1, 1)       f32  -- per-batch expanded-mask sum  (output)
    # acc_ref    : VMEM (C, Kp)         f32  -- gathered preds accumulator   (scratch)
    t = pl.program_id(1)
    nt = pl.num_programs(1)

    @pl.when(t == 0)
    def _init():
        acc_ref[...] = jnp.zeros_like(acc_ref)

    # Gather via one-hot matmul on the MXU:
    #   preds[c, k] += sum_h feat[c, h] * (h + t*hw_tile == inds[k])
    idx = jnp.clip(inds_ref[0], 0, hw - 1)                       # (1, Kp), OOB-safe
    kp = idx.shape[-1]
    hw_ids = lax.broadcasted_iota(jnp.int32, (hw_tile, kp), 0) + t * hw_tile
    onehot = (hw_ids == idx).astype(jnp.float32)                 # (hw_tile, Kp)
    acc_ref[...] += jnp.dot(
        feat_ref[0], onehot,
        precision=lax.Precision.HIGHEST,       # exact selection (no bf16 rounding)
        preferred_element_type=jnp.float32)

    @pl.when(t == nt - 1)
    def _finalize():
        preds = acc_ref[...]                                     # (C, Kp)
        tgt = target_ref[0]                                      # (C, Kp)
        m = mask_ref[0]                                          # (1, Kp), 0/1
        d = (preds - tgt) * m                                    # == preds*m - tgt*m for 0/1 mask
        ad = jnp.abs(d)
        elem = jnp.where(ad < 1.0, 0.5 * d * d, ad - 0.5)        # smooth-L1, beta = 1
        num_ref[...] = jnp.reshape(jnp.sum(elem), (1, 1, 1))
        den_ref[...] = jnp.reshape(float(c_real) * jnp.sum(m), (1, 1, 1))


def _pick_hw_tile(hw):
    # Lane-aligned (multiple of 128) tile giving >=2 reduction steps when possible,
    # so the pipeline overlaps the fetch of tile t+1 with compute of tile t.
    for cand in (512, 256, 128):
        if hw % cand == 0 and hw // cand >= 2:
            return cand
    for cand in (512, 256, 128):
        if hw % cand == 0:
            return cand
    return hw  # full extent (allowed as a block dim)


def smooth_l1_loss(feat_nchw, target, inds, mask):
    """feat_nchw: (B, C, H, W) f32, target: (B, K, C) f32,
    inds: (B, K) int, mask: (B, K) {0,1}. Returns scalar f32 loss."""
    B, C, H, W = feat_nchw.shape
    K = inds.shape[1]
    HW = H * W

    feat = feat_nchw.reshape(B, C, HW).astype(jnp.float32)            # zero-copy reshape
    target_t = jnp.transpose(target.astype(jnp.float32), (0, 2, 1))   # (B, C, K) — tiny
    inds_i = inds.astype(jnp.int32)
    mask_f = mask.astype(jnp.float32)

    # Pad K up to a multiple of 128 so the per-batch (C, Kp) intermediates are lane-dense.
    # Padded positions carry mask = 0 (and target = 0) so they contribute nothing.
    Kp = max(128, ((K + 127) // 128) * 128)
    if Kp != K:
        pad = Kp - K
        target_t = jnp.pad(target_t, ((0, 0), (0, 0), (0, pad)))
        inds_i = jnp.pad(inds_i, ((0, 0), (0, pad)))
        mask_f = jnp.pad(mask_f, ((0, 0), (0, pad)))

    inds3 = inds_i.reshape(B, 1, Kp)
    mask3 = mask_f.reshape(B, 1, Kp)

    hw_tile = _pick_hw_tile(HW)
    nt = HW // hw_tile

    num_out, den_out = pl.pallas_call(
        functools.partial(_smooth_l1_kernel, hw=HW, hw_tile=hw_tile, c_real=C),
        out_shape=(jax.ShapeDtypeStruct((B, 1, 1), jnp.float32),
                   jax.ShapeDtypeStruct((B, 1, 1), jnp.float32)),
        grid_spec=pltpu.PrefetchScalarGridSpec(
            num_scalar_prefetch=0,
            grid=(B, nt),
            in_specs=[
                pl.BlockSpec((1, C, hw_tile), lambda b, t: (b, 0, t)),
                pl.BlockSpec((1, C, Kp), lambda b, t: (b, 0, 0)),
                pl.BlockSpec((1, 1, Kp), lambda b, t: (b, 0, 0)),
                pl.BlockSpec((1, 1, Kp), lambda b, t: (b, 0, 0)),
            ],
            out_specs=[
                pl.BlockSpec((1, 1, 1), lambda b, t: (b, 0, 0)),
                pl.BlockSpec((1, 1, 1), lambda b, t: (b, 0, 0)),
            ],
            scratch_shapes=[pltpu.VMEM((C, Kp), jnp.float32)],
        ),
        compiler_params=pltpu.CompilerParams(
            dimension_semantics=("parallel", "arbitrary")),
    )(feat, target_t, inds3, mask3)

    return jnp.sum(num_out) / (jnp.sum(den_out) + 1e-7)


def _reference_loss(feat_nchw, target, inds, mask):
    B, C, H, W = feat_nchw.shape
    K = inds.shape[1]
    feat = jnp.transpose(feat_nchw, (0, 2, 3, 1)).reshape(B, H * W, C)
    preds = jnp.take_along_axis(
        feat, jnp.broadcast_to(inds[:, :, None].astype(jnp.int32), (B, K, C)), axis=1
    )
    m = jnp.broadcast_to(mask.astype(jnp.float32)[:, :, None], preds.shape)
    d = preds * m - target * m
    ad = jnp.abs(d)
    elem = jnp.where(ad < 1.0, 0.5 * d * d, ad - 0.5)
    return jnp.sum(elem) / (jnp.sum(m) + 1e-7)


if __name__ == "__main__":
    key = jax.random.PRNGKey(0)
    B, C, H, W, K = 2, 4, 16, 16, 8

    k1, k2, k3, k4 = jax.random.split(key, 4)
    feat = jax.random.normal(k1, (B, C, H, W), dtype=jnp.float32)
    target = jax.random.normal(k2, (B, K, C), dtype=jnp.float32)
    inds = jax.random.randint(k3, (B, K), 0, H * W, dtype=jnp.int32)
    mask = (jax.random.uniform(k4, (B, K)) > 0.3).astype(jnp.int32)

    loss = smooth_l1_loss(feat, target, inds, mask)
    loss = jax.block_until_ready(loss)

    ref = jax.block_until_ready(_reference_loss(feat, target, inds, mask))
    assert np.allclose(np.asarray(loss), np.asarray(ref), rtol=1e-5, atol=1e-6), (loss, ref)

    print("KERNEL_OK")
</pallas_src>

<mosaic_0001>
module attributes {stable_mosaic.version = 11 : i64} {
  func.func @_smooth_l1_kernel(%arg0: i32, %arg1: i32, %arg2: memref<1x4x128xf32, #tpu.memory_space<vmem>>, %arg3: memref<1x4x128xf32, #tpu.memory_space<vmem>>, %arg4: memref<1x1x128xi32, #tpu.memory_space<vmem>>, %arg5: memref<1x1x128xf32, #tpu.memory_space<vmem>>, %arg6: memref<1x1x1xf32, #tpu.memory_space<vmem>>, %arg7: memref<1x1x1xf32, #tpu.memory_space<vmem>>, %arg8: memref<4x128xf32, #tpu.memory_space<vmem>>) attributes {dimension_semantics = [#tpu.dimension_semantics<parallel>, #tpu.dimension_semantics<arbitrary>], iteration_bounds = array<i64: 2, 2>, scalar_prefetch = 0 : i64, scratch_operands = 1 : i64, tpu.core_type = #tpu.core_type<tc>, window_params = [{transform_indices = @transform_0, window_bounds = array<i64: 1, 4, 128>}, {transform_indices = @transform_1, window_bounds = array<i64: 1, 4, 128>}, {transform_indices = @transform_2, window_bounds = array<i64: 1, 1, 128>}, {transform_indices = @transform_3, window_bounds = array<i64: 1, 1, 128>}, {transform_indices = @transform_4, window_bounds = array<i64: 1, 1, 1>}, {transform_indices = @transform_5, window_bounds = array<i64: 1, 1, 1>}]} {
    %c0_i32 = arith.constant 0 : i32
    %0 = arith.cmpi eq, %arg1, %c0_i32 : i32
    %1 = arith.extui %0 : i1 to i32
    %c0_i32_0 = arith.constant 0 : i32
    %2 = arith.cmpi ne, %1, %c0_i32_0 : i32
    scf.if %2 {
      %cst_12 = arith.constant 0.000000e+00 : f32
      %26 = vector.broadcast %cst_12 : f32 to vector<4x128xf32>
      %c0_13 = arith.constant 0 : index
      %c0_14 = arith.constant 0 : index
      %27 = vector.load %arg8[%c0_13, %c0_14] : memref<4x128xf32, #tpu.memory_space<vmem>>, vector<4x128xf32>
      tpu.vector_store %arg8[%c0_13, %c0_14], %26 {strides = array<i32>} : memref<4x128xf32, #tpu.memory_space<vmem>>, vector<4x128xf32>,
    } else {
    }
    %c0 = arith.constant 0 : index
    %c0_1 = arith.constant 0 : index
    %c0_2 = arith.constant 0 : index
    %3 = vector.load %arg4[%c0, %c0_1, %c0_2] : memref<1x1x128xi32, #tpu.memory_space<vmem>>, vector<1x1x128xi32>
    %4 = vector.shape_cast %3 : vector<1x1x128xi32> to vector<1x128xi32>
    %c0_i32_3 = arith.constant 0 : i32
    %c255_i32 = arith.constant 255 : i32
    %5 = vector.broadcast %c0_i32_3 : i32 to vector<1x128xi32>
    %6 = arith.maxsi %5, %4 : vector<1x128xi32>
    %7 = vector.broadcast %c255_i32 : i32 to vector<1x128xi32>
    %8 = arith.minsi %7, %6 : vector<1x128xi32>
    %9 = tpu.iota {dimensions = array<i32: 0>} : vector<128x128xi32>
    %c128_i32 = arith.constant 128 : i32
    %10 = arith.muli %arg1, %c128_i32 : i32
    %11 = vector.broadcast %10 : i32 to vector<128x128xi32>
    %12 = arith.addi %9, %11 : vector<128x128xi32>
    %13 = vector.broadcast %8 : vector<1x128xi32> to vector<128x128xi32>
    %14 = arith.cmpi eq, %12, %13 : vector<128x128xi32>
    %15 = arith.extui %14 : vector<128x128xi1> to vector<128x128xi32>
    %16 = arith.sitofp %15 : vector<128x128xi32> to vector<128x128xf32>
    %c0_4 = arith.constant 0 : index
    %c0_5 = arith.constant 0 : index
    %17 = vector.load %arg8[%c0_4, %c0_5] : memref<4x128xf32, #tpu.memory_space<vmem>>, vector<4x128xf32>
    %c0_6 = arith.constant 0 : index
    %c0_7 = arith.constant 0 : index
    %c0_8 = arith.constant 0 : index
    %18 = vector.load %arg2[%c0_6, %c0_7, %c0_8] : memref<1x4x128xf32, #tpu.memory_space<vmem>>, vector<1x4x128xf32>
    %19 = vector.shape_cast %18 : vector<1x4x128xf32> to vector<4x128xf32>
    %cst = arith.constant dense<0.000000e+00> : vector<4x128xf32>
    %20 = tpu.matmul %19, %16, %cst {dimension_numbers = #tpu.dot_dimension_numbers<[1], [0], [0], [1], [0, 0, 1, 1], [], []>, precision = #tpu.contract_precision<fp32>} : vector<4x128xf32>, vector<128x128xf32>, vector<4x128xf32> -> vector<4x128xf32>
    %21 = arith.addf %17, %20 : vector<4x128xf32>
    %c0_9 = arith.constant 0 : index
    %c0_10 = arith.constant 0 : index
    %22 = vector.load %arg8[%c0_9, %c0_10] : memref<4x128xf32, #tpu.memory_space<vmem>>, vector<4x128xf32>
    tpu.vector_store %arg8[%c0_9, %c0_10], %21 {strides = array<i32>} : memref<4x128xf32, #tpu.memory_space<vmem>>, vector<4x128xf32>,
    %c1_i32 = arith.constant 1 : i32
    %23 = arith.cmpi eq, %arg1, %c1_i32 : i32
    %24 = arith.extui %23 : i1 to i32
    %c0_i32_11 = arith.constant 0 : i32
    %25 = arith.cmpi ne, %24, %c0_i32_11 : i32
    scf.if %25 {
      %c0_12 = arith.constant 0 : index
      %c0_13 = arith.constant 0 : index
      %26 = vector.load %arg8[%c0_12, %c0_13] : memref<4x128xf32, #tpu.memory_space<vmem>>, vector<4x128xf32>
      %c0_14 = arith.constant 0 : index
      %c0_15 = arith.constant 0 : index
      %c0_16 = arith.constant 0 : index
      %27 = vector.load %arg3[%c0_14, %c0_15, %c0_16] : memref<1x4x128xf32, #tpu.memory_space<vmem>>, vector<1x4x128xf32>
      %28 = vector.shape_cast %27 : vector<1x4x128xf32> to vector<4x128xf32>
      %c0_17 = arith.constant 0 : index
      %c0_18 = arith.constant 0 : index
      %c0_19 = arith.constant 0 : index
      %29 = vector.load %arg5[%c0_17, %c0_18, %c0_19] : memref<1x1x128xf32, #tpu.memory_space<vmem>>, vector<1x1x128xf32>
      %30 = vector.shape_cast %29 : vector<1x1x128xf32> to vector<1x128xf32>
      %31 = arith.subf %26, %28 : vector<4x128xf32>
      %32 = vector.broadcast %30 : vector<1x128xf32> to vector<4x128xf32>
      %33 = arith.mulf %31, %32 : vector<4x128xf32>
      %34 = math.absf %33 : vector<4x128xf32>
      %cst_20 = arith.constant 1.000000e+00 : f32
      %35 = vector.broadcast %cst_20 : f32 to vector<4x128xf32>
      %36 = arith.cmpf olt, %34, %35 : vector<4x128xf32>
      %cst_21 = arith.constant 5.000000e-01 : f32
      %37 = vector.broadcast %cst_21 : f32 to vector<4x128xf32>
      %38 = arith.mulf %37, %33 : vector<4x128xf32>
      %39 = arith.mulf %38, %33 : vector<4x128xf32>
      %cst_22 = arith.constant 5.000000e-01 : f32
      %40 = vector.broadcast %cst_22 : f32 to vector<4x128xf32>
      %41 = arith.subf %34, %40 : vector<4x128xf32>
      %42 = arith.select %36, %39, %41 : vector<4x128xi1>, vector<4x128xf32>
      %43 = vector.shape_cast %42 : vector<4x128xf32> to vector<1x4x128xf32>
      %cst_23 = arith.constant dense<0.000000e+00> : vector<1xf32>
      %44 = vector.multi_reduction <add>, %43, %cst_23 [1, 2] : vector<1x4x128xf32> to vector<1xf32>
      %45 = vector.shape_cast %44 : vector<1xf32> to vector<1x1x1xf32>
      %46 = vector.extract %45[0, 0, 0] : f32 from vector<1x1x1xf32>
      %47 = vector.broadcast %46 : f32 to vector<1x1x1xf32>
      %c0_24 = arith.constant 0 : index
      %c0_25 = arith.constant 0 : index
      %c0_26 = arith.constant 0 : index
      %48 = vector.load %arg6[%c0_24, %c0_25, %c0_26] : memref<1x1x1xf32, #tpu.memory_space<vmem>>, vector<1x1x1xf32>
      tpu.vector_store %arg6[%c0_24, %c0_25, %c0_26], %47 {strides = array<i32>} : memref<1x1x1xf32, #tpu.memory_space<vmem>>, vector<1x1x1xf32>,
      %49 = vector.shape_cast %30 : vector<1x128xf32> to vector<1x1x128xf32>
      %cst_27 = arith.constant dense<0.000000e+00> : vector<1xf32>
      %50 = vector.multi_reduction <add>, %49, %cst_27 [1, 2] : vector<1x1x128xf32> to vector<1xf32>
      %51 = vector.shape_cast %50 : vector<1xf32> to vector<1x1x1xf32>
      %52 = vector.extract %51[0, 0, 0] : f32 from vector<1x1x1xf32>
      %cst_28 = arith.constant 4.000000e+00 : f32
      %53 = arith.mulf %cst_28, %52 : f32
      %54 = vector.broadcast %53 : f32 to vector<1x1x1xf32>
      %c0_29 = arith.constant 0 : index
      %c0_30 = arith.constant 0 : index
      %c0_31 = arith.constant 0 : index
      %55 = vector.load %arg7[%c0_29, %c0_30, %c0_31] : memref<1x1x1xf32, #tpu.memory_space<vmem>>, vector<1x1x1xf32>
      tpu.vector_store %arg7[%c0_29, %c0_30, %c0_31], %54 {strides = array<i32>} : memref<1x1x1xf32, #tpu.memory_space<vmem>>, vector<1x1x1xf32>,
    } else {
    }
    return
  }
  func.func @transform_0(%arg0: i32, %arg1: i32) -> (i32, i32, i32) {
    %c0_i32 = arith.constant 0 : i32
    %c0_i32_0 = arith.constant 0 : i32
    return %arg0, %c0_i32, %arg1 : i32, i32, i32
  }
  func.func @transform_1(%arg0: i32, %arg1: i32) -> (i32, i32, i32) {
    %c0_i32 = arith.constant 0 : i32
    %c0_i32_0 = arith.constant 0 : i32
    %c0_i32_1 = arith.constant 0 : i32
    return %arg0, %c0_i32, %c0_i32_0 : i32, i32, i32
  }
  func.func @transform_2(%arg0: i32, %arg1: i32) -> (i32, i32, i32) {
    %c0_i32 = arith.constant 0 : i32
    %c0_i32_0 = arith.constant 0 : i32
    %c0_i32_1 = arith.constant 0 : i32
    return %arg0, %c0_i32, %c0_i32_0 : i32, i32, i32
  }
  func.func @transform_3(%arg0: i32, %arg1: i32) -> (i32, i32, i32) {
    %c0_i32 = arith.constant 0 : i32
    %c0_i32_0 = arith.constant 0 : i32
    %c0_i32_1 = arith.constant 0 : i32
    return %arg0, %c0_i32, %c0_i32_0 : i32, i32, i32
  }
  func.func @transform_4(%arg0: i32, %arg1: i32) -> (i32, i32, i32) {
    %c0_i32 = arith.constant 0 : i32
    %c0_i32_0 = arith.constant 0 : i32
    %c0_i32_1 = arith.constant 0 : i32
    return %arg0, %c0_i32, %c0_i32_0 : i32, i32, i32
  }
  func.func @transform_5(%arg0: i32, %arg1: i32) -> (i32, i32, i32) {
    %c0_i32 = arith.constant 0 : i32
    %c0_i32_0 = arith.constant 0 : i32
    %c0_i32_1 = arith.constant 0 : i32
    return %arg0, %c0_i32, %c0_i32_0 : i32, i32, i32
  }
}

</mosaic_0001>

<bundles_post_ra>
// kernel: tpu_custom_call.1
= control target key start
LH: loop header
LB: loop body
LE: loop exit
PB: predicated region body
PF: predicated region fallthrough
CT: control target
= control target key end

     0   :  { %s2823_s0 = inlined_call_operand.hbm [shape: f32[2,4,256], index: 0, kind: input, shape index: {}]   ;;  %s2824_s1 = inlined_call_operand.hbm [shape: f32[2,4,128], index: 1, kind: input, shape index: {}]   ;;  %s2825_s2 = inlined_call_operand.vmem [shape: s32[2,1,128], index: 2, kind: input, shape index: {}]   ;;  %s2826_s3 = inlined_call_operand.vmem [shape: f32[2,1,128], index: 3, kind: input, shape index: {}]   ;;  %s2827_s4 = inlined_call_operand.vmem [shape: f32[2,1,1], index: 4, kind: output, shape index: {0}]   ;;  %s2828_s5 = inlined_call_operand.vmem [shape: f32[2,1,1], index: 5, kind: output, shape index: {1}]  }
   0x1   :  { %2836 = sst [smem:[#allocation12_spill]] %s2827_s4 }
   0x2   :  { %2837 = sst [smem:[#allocation13_spill]] %s2828_s5 }
   0x3   :  { %11 = vsyncpa [#allocation4], 0 }
   0x4   :  { %13 = vsyncpa [#allocation4 + $0x1], 0 }
   0x5   :  { %14 = vsyncpa [#allocation6], 0 }
   0x6   :  { %16 = vsyncpa [#allocation6 + $0x1], 0  ;;  %s2097_s18 = smov 0   ;;  %s2099_s19 = smov 0  }
   0x7   :  { %s2101_s20 = smov 0   ;;  %s2103_s21 = smov 0  }
   0x8   :  { %s2105_s22 = smov 0   ;;  %s2107_s23 = smov 0  }
   0x9   :  { %s2109_s24 = smov 0   ;;  %s2111_s25 = smov 0  }
   0xa   :  { %s2113_s26 = smov 0   ;;  %s2115_s27 = smov 0  }
   0xb   :  { %s2117_s28 = smov 0  }
   0xc LB: > { %2838 = sst [smem:[#allocation9_spill]] %s2042_s24  ;;  %s1257_s29 = sadd.s32 4294967295, %s2058_s28   ;;  %s2058_s28 = sphi %s2117_s28, %s22_s28   ;;  %s2054_s27 = sphi %s2115_s27, %s2889_s27   ;;  %s2050_s26 = sphi %s2113_s26, %s2888_s26   ;;  %s2046_s25 = sphi %s2111_s25, %s2887_s25   ;;  %s2042_s24 = sphi %s2109_s24, %s2886_s24   ;;  %s2038_s23 = sphi %s2107_s23, %s2885_s23   ;;  %s2034_s22 = sphi %s2105_s22, %s2884_s22   ;;  %s2030_s21 = sphi %s2103_s21, %s2883_s21   ;;  %s2026_s20 = sphi %s2101_s20, %s2882_s20   ;;  %s2022_s19 = sphi %s2099_s19, %s2881_s19   ;;  %s2018_s18 = sphi %s2097_s18, %s2880_s18  }
   0xd   : > { %s31_s30 = sadd.s32 1, %s2050_s26  ;;  %s34_s6 = sadd.s32 1, %s2054_s27 }
   0xe   : > { %p32_p0 = scmp.ge.s32.totalorder %s31_s30, 2  ;;  %s43_s7 = sadd.s32 1, %s2038_s23 }
   0xf   : > { %p50_p1 = scmp.ne.s32.totalorder %s2038_s23, %s2034_s22  ;;  %p2833_p2 = scmp.eq.s32.totalorder %s2058_s28, 0 }
  0x10   : > { %s2891_s30 = smov (%p32_p0, %s31_s30), 0  ;;  %s2893_s6 = smov (!%p32_p0, %s34_s6), %s2054_s27 }
  0x11   : > { %2839 = sst [smem:[#allocation10_spill]] %s2891_s30  ;;  %s39_s8 = ssub.s32 %s2050_s26, %s2891_s30 }
  0x12   : > { %p36_p3 = scmp.ge.s32.totalorder %s2893_s6, 2  ;;  %p56_p4 = scmp.ne.s32.totalorder %s2034_s22, %s2030_s21 }
  0x13   : > { %p2165_p5 = por %p2833_p2, %p50_p1  ;;  %p2169_p6 = scmp.eq.s32.totalorder %s1257_s29, 0 }
  0x14   : > { %s2895_s6 = smov (%p36_p3, %s2893_s6), 0  ;;  %p2832_p8 = scmp.lt.s32.totalorder %s2058_s28, 4 }
  0x15   : > { %2842 = sst [smem:[#allocation11_spill]] %s2895_s6  ;;  %p2177_p7 = por %p2169_p6, %p56_p4 }
  0x16   : > { %s2183_s12 = ssub.s32 %s2054_s27, %s2895_s6  ;;  %s210_s14 = sand.u32 1, %s2038_s23  }
  0x17   : > { %s2843_s11 = scalar_select %p2177_p7, 1, 0 }
  0x18   : > { %s40_s13 = sor.u32 %s39_s8, %s2183_s12  ;;  %s1261_s15 = sshll.u32 %s210_s14, 2 }
  0x19   : > { %p41_p10 = scmp.eq.s32.totalorder %s40_s13, 0  ;;  %s1262_s17 = sshll.u32 %s2054_s27, 1 }
  0x1a   : > { %s219_s21 = sadd.s32 %s2050_s26, %s1262_s17  ;;  %s214_s29 = scalar_lea.vmem [#allocation3], %s1261_s15 }
  0x1b   : > { %s2190_s16 = scalar_select %p41_p10, %s2038_s23, %s43_s7  }
  0x1c   : > { %s223_s30 = sshll.u32 %s214_s29, 4  ;;  %s1263_s24 = sshll.u32 %s219_s21, 6  ;;  %s2194_s30 = int_to_ptr.vmem [resolvable:$true] %s223_s30 }
  0x1d   : > { %s2199_s4 = scalar_lea.hbm %s2823_s0, %s1263_s24  ;;  %p2205_p11 = pnand %p2832_p8, %p2165_p5 }
  0x1e   : > { %s211_s8 = scalar_lea.sflag [#allocation4], %s210_s14  ;;  %s1904_s13 = scalar_lea.hbm %s2199_s4, 64 }
  0x1f   : > { %p1905_p0 = scmp.ne.s32.totalorder %s2199_s4, %s1904_s13  ;;  %p1906_p1 = pneg %p2205_p11 }
  0x20   : > { %s1909_s6 = scalar_lea.hbm %s2823_s0, 256  ;;  %p1910_p5 = scmp.lt.u32.totalorder %s2199_s4, %s2823_s0 }
  0x21   : > { %p1907_p3 = pnand %p1906_p1, %p1905_p0  ;;  %p1911_p10 = scmp.lt.u32.totalorder %s1909_s6, %s1904_s13 }
  0x22   : > { %p1913_p2 = scmp.lt.u32.totalorder %s1904_s13, %s2199_s4 }
  0x23   : > { %p1908_p4 = pneg %p1907_p3  ;;  %p1912_p8 = por %p1911_p10, %p1910_p5 }
  0x25   : > { %p1914_p9 = por %p1913_p2, %p1912_p8 }
  0x27   : > { %p1915_p12 = pnand %p1914_p9, %p1908_p4 }
  0x29   : > { %1918 = shalt.err (!%p1915_p12)
}
  0x2a   : > { %s1919_s14 = scalar_lea.vmem %s2194_s30, 64  ;;  %s2060_s17 = smov [#allocation3]  }
  0x2b   : > { %p1920_p0 = scmp.ne.s32.totalorder %s2194_s30, %s1919_s14  ;;  %s1924_s21 = sshll.u32 %s2060_s17, 4  ;;  %s1925_s21 = int_to_ptr.vmem [resolvable:$false] %s1924_s21 }
  0x2c   : > { %s1926_s29 = scalar_lea.vmem %s1925_s21, 128  ;;  %p1927_p7 = scmp.lt.s32.totalorder %s2194_s30, %s1925_s21 }
  0x2d   : > { %p1922_p3 = pnand %p1920_p0, %p1906_p1  ;;  %p1928_p5 = scmp.lt.s32.totalorder %s1926_s29, %s1919_s14 }
  0x2f   : > { %p1923_p13 = pneg %p1922_p3  ;;  %p1929_p10 = por %p1928_p5, %p1927_p7 }
  0x31   : > { %p1930_p2 = pnand %p1929_p10, %p1923_p13 }
  0x33   : > { %1933 = shalt.err (!%p1930_p2)
}
  0x34   : > { %1806 = dma.hbm_to_vmem [thread:$0]  (!%p2205_p11), %s2199_s4, 64, %s2194_s30, %s211_s8  }
  0x35   : > { %p2845_p7 = scmp.lt.s32.totalorder %s2058_s28, 5  ;;  %p2846_p8 = scmp.ge.s32.totalorder %s2058_s28, 1 }
  0x36   : > { %s69_s13 = sadd.s32 1, %s2026_s20  ;;  %p76_p12 = scmp.ne.s32.totalorder %s2026_s20, %s2022_s19 }
  0x37   : > { %p2240_p9 = pnand %p2846_p8, %p2845_p7  ;;  %p2848_p13 = scmp.eq.s32.totalorder %s2183_s12, 0 }
  0x38   : > { %p2849_p1 = scmp.eq.s32.totalorder %s2058_s28, 0  ;;  %p82_p0 = scmp.ne.s32.totalorder %s2022_s19, %s2018_s18 }
  0x39   : > { %s2250_s5 = scalar_select %p2848_p13, %s2026_s20, %s69_s13  }
  0x3a   : > { %p78_p4 = por %p76_p12, %p2849_p1  ;;  %s230_s24 = sand.u32 1, %s2026_s20  }
  0x3b   : > { %s1265_s6 = sshll.u32 %s2054_s27, 6  ;;  %p2260_p3 = por %p82_p0, %p2169_p6 }
  0x3c   : > { %s1264_s4 = sshll.u32 %s230_s24, 2  ;;  %s2267_s15 = scalar_lea.hbm %s2824_s1, %s1265_s6 }
  0x3d   : > { %s2850_s9 = scalar_select %p2260_p3, 1, 0 }
  0x3e   : > { %p2851_p11 = scmp.lt.s32.totalorder %s2058_s28, 4  ;;  %s234_s10 = scalar_lea.vmem [#allocation5], %s1264_s4 }
  0x3f   : > { %s241_s12 = sshll.u32 %s234_s10, 4  ;;  %s231_s14 = scalar_lea.sflag [#allocation6], %s230_s24  ;;  %s2275_s12 = int_to_ptr.vmem [resolvable:$true] %s241_s12 }
  0x40   : > { %p2271_p5 = pnand %p2851_p11, %p78_p4  ;;  %s1934_s17 = scalar_lea.hbm %s2267_s15, 64 }
  0x41   : > { %p1935_p6 = scmp.ne.s32.totalorder %s2267_s15, %s1934_s17  ;;  %s1939_s13 = scalar_lea.hbm %s2824_s1, 128 }
  0x42   : > { %p1936_p10 = pneg %p2271_p5  ;;  %p1940_p8 = scmp.lt.u32.totalorder %s2267_s15, %s2824_s1 }
  0x43   : > { %p1941_p12 = scmp.lt.u32.totalorder %s1939_s13, %s1934_s17  ;;  %p1943_p1 = scmp.lt.u32.totalorder %s1934_s17, %s2267_s15 }
  0x44   : > { %p1937_p2 = pnand %p1936_p10, %p1935_p6 }
  0x45   : > { %p1942_p13 = por %p1941_p12, %p1940_p8 }
  0x46   : > { %p1938_p7 = pneg %p1937_p2 }
  0x47   : > { %p1944_p4 = por %p1943_p1, %p1942_p13 }
  0x49   : > { %p1945_p0 = pnand %p1944_p4, %p1938_p7 }
  0x4b   : > { %1948 = shalt.err (!%p1945_p0)
}
  0x4c   : > { %s1949_s24 = scalar_lea.vmem %s2275_s12, 64  ;;  %s2061_s4 = smov [#allocation5]  }
  0x4d   : > { %p1950_p11 = scmp.ne.s32.totalorder %s2275_s12, %s1949_s24  ;;  %s1954_s8 = sshll.u32 %s2061_s4, 4  ;;  %s1955_s8 = int_to_ptr.vmem [resolvable:$false] %s1954_s8 }
  0x4e   : > { %s1956_s10 = scalar_lea.vmem %s1955_s8, 128  ;;  %p1957_p3 = scmp.lt.s32.totalorder %s2275_s12, %s1955_s8 }
  0x4f   : > { %p1952_p6 = pnand %p1950_p11, %p1936_p10  ;;  %p1958_p8 = scmp.lt.s32.totalorder %s1956_s10, %s1949_s24 }
  0x51   : > { %p1953_p2 = pneg %p1952_p6  ;;  %p1959_p12 = por %p1958_p8, %p1957_p3 }
  0x53   : > { %p1960_p13 = pnand %p1959_p12, %p1953_p2 }
  0x55   : > { %1963 = shalt.err (!%p1960_p13)
}
  0x56   : > { %1809 = dma.hbm_to_vmem [thread:$0]  (!%p2271_p5), %s2267_s15, 64, %s2275_s12, %s231_s14  }
  0x57   : > { %262 = sbr.rel (%p2240_p9) target bundleno = 677 (0x2a5), region = 36  ;;  %s264_s17 = sand.u32 (!%p2240_p9), 1, %s2034_s22  }
  0x58   : > { %s2305_s21 = sshll.u32 (!%p2240_p9), %s264_s17, 2  ;;  %s265_s29 = scalar_lea.sflag (!%p2240_p9), [#allocation4], %s264_s17 }
  0x59   : > { %s268_s13 = scalar_lea.vmem (!%p2240_p9), [#allocation3], %s2305_s21  ;;  %p2853_p10 = scmp.ne.s32.totalorder (!%p2240_p9), %s2843_s11, 0 }
  0x5e   : > { %2009 = dma.done.wait (%p2853_p10), %s265_s29, 64  }
  0x5f   : > { %2011 = vsyncadd (%p2853_p10), %s265_s29, 4294967232  ;;  %s273_s18 = sand.u32 1, %s2022_s19   ;;  %p2854_p9 = scmp.ne.s32.totalorder %s2850_s9, 0 }
  0x60   : > { %s2313_s15 = sshll.u32 %s273_s18, 2  ;;  %s274_s7 = scalar_lea.sflag [#allocation6], %s273_s18 }
  0x61   : > { %2013 = dma.done.wait (%p2854_p9), %s274_s7, 64  }
  0x62   : > { %2015 = vsyncadd (%p2854_p9), %s274_s7, 4294967232  ;;  %p316_p3 = scmp.lt.s32.totalorder %s2046_s25, 1  ;;  %s2855_s10 = sld [smem:[#allocation12_spill]] }
  0x63   : > { %s2856_s18 = sld [smem:[#allocation13_spill]]  ;;  %s2857_s12 = sld [smem:[#allocation9_spill]] }
  0x64   : > { %s2897_s25 = smov (!%p316_p3, %s2046_s25), 1 }
  0x65   : > { %s318_s6 = scalar_lea.vmem %s2825_s2, %s2897_s25  ;;  %s321_s4 = scalar_lea.vmem %s2826_s3, %s2897_s25 }
  0x68   : > { %s324_s17 = scalar_lea.vmem %s2855_s10, %s2897_s25 }
  0x69   : > { %s327_s7 = scalar_lea.vmem %s2856_s18, %s2897_s25  ;;  %p1269_p5 = scmp.ne.s32.totalorder %s2857_s12, 0 }
  0x6a   : > { %v2062_v0 = vmov (!%p1269_p5), 0.0  }
  0x6b   : > { %331 = sbr.rel (%p1269_p5) target bundleno = 114 (0x72), region = 48  ;;  %332 = vst [vmem:[#allocation2] sm:$0xf] (!%p1269_p5), %v2062_v0 }
  0x72 PF: > { %v333_v1 = vld [vmem:[%s318_s6] sm:$0x1]  ;;  %s2858_s11 = sld [smem:[#allocation9_spill]]  ;;  %v338_v2 = vlaneseq  ;;  %v2063_v3 = vmov 0.0|0.0   ;;  %v2346_v5 = vld [vmem:[%s268_s13] sm:$0xf] }
  0x73   : > { %1651 = vmatprep.subr.bf16.mxu0 %v2063_v3  ;;  %vm334_vm0 = vcmp.gt.s32.totalorder %v333_v1, 0  ;;  %1675 = vmatprep.subr.bf16.mxu1 %v2063_v3  ;;  %vm2064_vm1 = vmmov 0   ;;  %v2065_v8 = vmov 0.0   ;;  %v2355_v9 = vand.u32 4294901760, %v2346_v5 }
  0x74   : > { %v335_v6 = vsel %vm334_vm0, %v333_v1, 0  ;;  %v2348_v7 = vshrl.u32 %v338_v2, 7  ;;  %1473 = vmatprep.mubr.msk.f32.mxu0 %vm2064_vm1, %v2065_v8  ;;  %1508 = vmatprep.mubr.msk.f32.mxu1 %vm2064_vm1, %v2065_v8  ;;  %v2066_v31 = vmov 1.0|1.0  }
  0x75   : > { %vm336_vm2 = vcmp.lt.s32.totalorder %v335_v6, 255 }
  0x76   : > { %v337_v10 = vsel %vm336_vm2, %v335_v6, 255  ;;  %v340_v11 = vadd.s32 8, %v2348_v7  ;;  %v375_v13 = vsub.s32 0, %v2348_v7  ;;  %v341_v14 = vadd.s32 16, %v2348_v7 }
  0x77   : > { %v342_v15 = vadd.s32 24, %v2348_v7  ;;  %v343_v16 = vadd.s32 32, %v2348_v7  ;;  %v344_v17 = vadd.s32 40, %v2348_v7  ;;  %v345_v20 = vadd.s32 48, %v2348_v7 }
  0x78   : > { %s1270_s14 = sshll.u32 %s2858_s11, 7  ;;  %v2368_v19 = vrot.slane %v337_v10, %v375_v13  ;;  %v346_v21 = vadd.s32 56, %v2348_v7  ;;  %v347_v56 = vadd.s32 64, %v2348_v7  ;;  %v348_v57 = vadd.s32 72, %v2348_v7  ;;  %p1335_p7 = scmp.ne.s32.totalorder %s2858_s11, 1 }
  0x79   : > { %v2343_v4 = vstv %s1270_s14  ;;  %v349_v1 = vadd.s32 80, %v2348_v7  ;;  %s2875_s13 = scalar_lea.vmem (!%p1335_p7), [#allocation5], %s2313_s15 }
  0x7a   : > { %v357_v12 = vadd.s32 %v2343_v4, %v2348_v7  ;;  %v358_v18 = vadd.s32 %v2343_v4, %v340_v11  ;;  %v359_v22 = vadd.s32 %v2343_v4, %v341_v14  ;;  %v360_v23 = vadd.s32 %v2343_v4, %v342_v15 }
  0x7b   : > { %v361_v24 = vadd.s32 %v2343_v4, %v343_v16  ;;  %v362_v25 = vadd.s32 %v2343_v4, %v344_v17  ;;  %v363_v26 = vadd.s32 %v2343_v4, %v345_v20  ;;  %v364_v27 = vadd.s32 %v2343_v4, %v346_v21 }
  0x7c   : > { %vm377_vm3 = vcmp.eq.s32.totalorder %v357_v12, %v2368_v19  ;;  %vm378_vm4 = vcmp.eq.s32.totalorder %v358_v18, %v2368_v19  ;;  %vm379_vm6 = vcmp.eq.s32.totalorder %v359_v22, %v2368_v19  ;;  %vm380_vm7 = vcmp.eq.s32.totalorder %v360_v23, %v2368_v19 }
  0x7d   : > { %v1271_v28 = vsel %vm377_vm3, 1.0, %v2065_v8  ;;  %v1272_v29 = vsel %vm378_vm4, 1.0, %v2065_v8  ;;  %vm2382_vm5 = vmpackc.low %vm378_vm4, %vm377_vm3  ;;  %v1273_v34 = vsel %vm379_vm6, 1.0, %v2065_v8  ;;  %v1274_v35 = vsel %vm380_vm7, 1.0, %v2065_v8 }
  0x7e   : > { %1653 = vmatpush3.bf16.msk.msra.mxu0 %vm2382_vm5, %v2066_v31  ;;  %v2391_v32 = vsub.f32 %v1271_v28, %v1271_v28  ;;  %v2393_v33 = vsub.f32 %v1272_v29, %v1272_v29  ;;  %vm2398_vm8 = vmpackc.low %vm380_vm7, %vm379_vm6  ;;  %v2402_v37 = vsub.f32 %v1273_v34, %v1273_v34  ;;  %v2404_v38 = vsub.f32 %v1274_v35, %v1274_v35 }
  0x7f   : > { %1654 = vmatprep.subr.bf16.mxu0 %v2063_v3  ;;  %vm381_vm9 = vcmp.eq.s32.totalorder %v361_v24, %v2368_v19  ;;  %vm382_vm10 = vcmp.eq.s32.totalorder %v362_v25, %v2368_v19  ;;  %vm383_vm11 = vcmp.eq.s32.totalorder %v363_v26, %v2368_v19  ;;  %vm384_vm12 = vcmp.eq.s32.totalorder %v364_v27, %v2368_v19 }
  0x80   : > { %v1275_v39 = vsel %vm381_vm9, 1.0, %v2065_v8  ;;  %v1276_v40 = vsel %vm382_vm10, 1.0, %v2065_v8  ;;  %v521_v41 = vand.u32 4294901760, %v2391_v32  ;;  %v528_v42 = vand.u32 4294901760, %v2393_v33  ;;  %vm2442_vm13 = vmpackc.low %vm382_vm10, %vm381_vm9 }
  0x81   : > { %v2416_v43 = vsub.f32 %v1275_v39, %v1275_v39  ;;  %v2418_v44 = vsub.f32 %v1276_v40, %v1276_v40  ;;  %v1277_v47 = vsel %vm383_vm11, 1.0, %v2065_v8  ;;  %v1278_v48 = vsel %vm384_vm12, 1.0, %v2065_v8  ;;  %vm2473_vm14 = vmpackc.low %vm384_vm12, %vm383_vm11 }
  0x82   : > { %1656 = vmatpush3.bf16.msk.msra.mxu0 %vm2398_vm8, %v2066_v31  ;;  %v522_v45 = vsub.f32 %v2391_v32, %v521_v41  ;;  %v529_v46 = vsub.f32 %v2393_v33, %v528_v42  ;;  %v2446_v50 = vsub.f32 %v1277_v47, %v1277_v47  ;;  %v2448_v51 = vsub.f32 %v1278_v48, %v1278_v48 }
  0x83   : > { %1657 = vmatprep.subr.bf16.mxu0 %v2063_v3  ;;  %v535_v52 = vand.u32 4294901760, %v2402_v37  ;;  %v542_v53 = vand.u32 4294901760, %v2404_v38  ;;  %v549_v60 = vand.u32 4294901760, %v2416_v43  ;;  %v556_v61 = vand.u32 4294901760, %v2418_v44 }
  0x84   : > { %v523_v54 = vand.u32 4294901760, %v522_v45  ;;  %v530_v55 = vand.u32 4294901760, %v529_v46  ;;  %v365_v63 = vadd.s32 %v2343_v4, %v347_v56  ;;  %v366_v0 = vadd.s32 %v2343_v4, %v348_v57 }
  0x85   : > { %v536_v58 = vsub.f32 %v2402_v37, %v535_v52  ;;  %v543_v59 = vsub.f32 %v2404_v38, %v542_v53  ;;  %v550_v11 = vsub.f32 %v2416_v43, %v549_v60  ;;  %v557_v12 = vsub.f32 %v2418_v44, %v556_v61 }
  0x86   : > { %1659 = vmatpush3.bf16.msk.msra.mxu0 %vm2442_vm13, %v2066_v31  ;;  %v1676_v62 = vpack.c.bf16 %v530_v55, %v523_v54  ;;  %vm385_vm15 = vcmp.eq.s32.totalorder %v365_v63, %v2368_v19  ;;  %vm386_vm0 = vcmp.eq.s32.totalorder %v366_v0, %v2368_v19  ;;  %v350_v14 = vadd.s32 88, %v2348_v7 }
  0x87   : > { %1660 = vmatprep.subr.bf16.mxu0 %v2063_v3  ;;  %v537_v6 = vand.u32 4294901760, %v536_v58  ;;  %v544_v10 = vand.u32 4294901760, %v543_v59  ;;  %v367_v15 = vadd.s32 %v2343_v4, %v349_v1  ;;  %v1279_v17 = vsel %vm385_vm15, 1.0, %v2065_v8  ;;  %vm2503_vm2 = vmpackc.low %vm386_vm0, %vm385_vm15 }
  0x88   : > { %1677 = vmatpush3.bf16.msra.mxu1 %v1676_v62  ;;  %v1280_v18 = vsel %vm386_vm0, 1.0, %v2065_v8  ;;  %v551_v20 = vand.u32 4294901760, %v550_v11  ;;  %v2495_v21 = vsub.f32 %v1279_v17, %v1279_v17  ;;  %v558_v23 = vand.u32 4294901760, %v557_v12 }
  0x89   : > { %1678 = vmatprep.subr.bf16.mxu1 %v2063_v3  ;;  %v1679_v16 = vpack.c.bf16 %v544_v10, %v537_v6  ;;  %v2497_v22 = vsub.f32 %v1280_v18, %v1280_v18  ;;  %v368_v24 = vadd.s32 %v2343_v4, %v350_v14  ;;  %vm387_vm3 = vcmp.eq.s32.totalorder %v367_v15, %v2368_v19 }
  0x8a   : > { %1662 = vmatpush3.bf16.msk.msra.mxu0 %vm2473_vm14, %v2066_v31  ;;  %v563_v26 = vand.u32 4294901760, %v2446_v50  ;;  %v570_v27 = vand.u32 4294901760, %v2448_v51  ;;  %v351_v28 = vadd.s32 96, %v2348_v7  ;;  %v1682_v29 = vpack.c.bf16 %v558_v23, %v551_v20 }
  0x8b   : > { %1663 = vmatprep.subr.bf16.mxu0 %v2063_v3  ;;  %vm388_vm4 = vcmp.eq.s32.totalorder %v368_v24, %v2368_v19  ;;  %v1281_v34 = vsel %vm387_vm3, 1.0, %v2065_v8  ;;  %v352_v35 = vadd.s32 104, %v2348_v7  ;;  %v577_v55 = vand.u32 4294901760, %v2495_v21 }
  0x8c   : > { %1680 = vmatpush3.bf16.msra.mxu1 %v1679_v16  ;;  %v1282_v39 = vsel %vm388_vm4, 1.0, %v2065_v8  ;;  %v2518_v40 = vsub.f32 %v1281_v34, %v1281_v34  ;;  %v564_v45 = vsub.f32 %v2446_v50, %v563_v26  ;;  %v571_v46 = vsub.f32 %v2448_v51, %v570_v27  ;;  %vm2537_vm6 = vmpackc.low %vm388_vm4, %vm387_vm3 }
  0x8d   : > { %1681 = vmatprep.subr.bf16.mxu1 %v2063_v3  ;;  %v2529_v47 = vsub.f32 %v1282_v39, %v1282_v39  ;;  %v369_v48 = vadd.s32 %v2343_v4, %v351_v28  ;;  %v370_v54 = vadd.s32 %v2343_v4, %v352_v35  ;;  %v584_v59 = vand.u32 4294901760, %v2497_v22 }
  0x8e   : > { %1665 = vmatpush3.bf16.msk.msra.mxu0 %vm2503_vm2, %v2066_v31  ;;  %v565_v57 = vand.u32 4294901760, %v564_v45  ;;  %v572_v58 = vand.u32 4294901760, %v571_v46  ;;  %v353_v62 = vadd.s32 112, %v2348_v7  ;;  %v578_v63 = vsub.f32 %v2495_v21, %v577_v55 }
  0x8f   : > { %1666 = vmatprep.subr.bf16.mxu0 %v2063_v3  ;;  %vm389_vm7 = vcmp.eq.s32.totalorder %v369_v48, %v2368_v19  ;;  %vm390_vm9 = vcmp.eq.s32.totalorder %v370_v54, %v2368_v19  ;;  %v354_v0 = vadd.s32 120, %v2348_v7  ;;  %v585_v11 = vsub.f32 %v2497_v22, %v584_v59 }
  0x90   : > { %1683 = vmatpush3.bf16.msra.mxu1 %v1682_v29  ;;  %v1685_v1 = vpack.c.bf16 %v572_v58, %v565_v57  ;;  %v1283_v6 = vsel %vm389_vm7, 1.0, %v2065_v8  ;;  %v1284_v10 = vsel %vm390_vm9, 1.0, %v2065_v8  ;;  %v579_v15 = vand.u32 4294901760, %v578_v63  ;;  %vm2568_vm10 = vmpackc.low %vm390_vm9, %vm389_vm7 }
  0x91   : > { %1684 = vmatprep.subr.bf16.mxu1 %v2063_v3  ;;  %v2560_v12 = vsub.f32 %v1283_v6, %v1283_v6  ;;  %v2562_v14 = vsub.f32 %v1284_v10, %v1284_v10  ;;  %v371_v16 = vadd.s32 %v2343_v4, %v353_v62  ;;  %v586_v18 = vand.u32 4294901760, %v585_v11 }
  0x92   : > { %1668 = vmatpush3.bf16.msk.msra.mxu0 %vm2537_vm6, %v2066_v31  ;;  %v372_v20 = vadd.s32 %v2343_v4, %v354_v0  ;;  %v591_v23 = vand.u32 4294901760, %v2518_v40  ;;  %v598_v24 = vand.u32 4294901760, %v2529_v47  ;;  %v2578_v28 = vsub.f32 %v2346_v5, %v2355_v9 }
  0x93   : > { %1669 = vmatprep.subr.bf16.mxu0 %v2063_v3  ;;  %vm391_vm11 = vcmp.eq.s32.totalorder %v371_v16, %v2368_v19  ;;  %v605_v29 = vand.u32 4294901760, %v2560_v12  ;;  %v1688_v34 = vpack.c.bf16 %v586_v18, %v579_v15  ;;  %v612_v58 = vand.u32 4294901760, %v2562_v14 }
  0x94   : > { %1686 = vmatpush3.bf16.msra.mxu1 %v1685_v1  ;;  %vm392_vm12 = vcmp.eq.s32.totalorder %v372_v20, %v2368_v19  ;;  %v1285_v4 = vsel %vm391_vm11, 1.0, %v2065_v8  ;;  %v592_v35 = vsub.f32 %v2518_v40, %v591_v23  ;;  %v599_v45 = vsub.f32 %v2529_v47, %v598_v24 }
  0x95   : > { %1687 = vmatprep.subr.bf16.mxu1 %v2063_v3  ;;  %v1286_v5 = vsel %vm392_vm12, 1.0, %v2065_v8  ;;  %v2591_v39 = vsub.f32 %v1285_v4, %v1285_v4  ;;  %v510_v19 = vand.u32 4294901760, %v2578_v28  ;;  %vm2598_vm15 = vmpackc.low %vm392_vm12, %vm391_vm11  ;;  %v606_v57 = vsub.f32 %v2560_v12, %v605_v29 }
  0x96   : > { %1671 = vmatpush3.bf16.msk.msra.mxu0 %vm2568_vm10, %v2066_v31  ;;  %v2602_v48 = vsub.f32 %v1286_v5, %v1286_v5  ;;  %v593_v54 = vand.u32 4294901760, %v592_v35  ;;  %v600_v62 = vand.u32 4294901760, %v599_v45  ;;  %v613_v6 = vsub.f32 %v2562_v14, %v612_v58 }
  0x97   : > { %1672 = vmatprep.subr.bf16.mxu0 %v2063_v3  ;;  %v511_v63 = vsub.f32 %v2578_v28, %v510_v19  ;;  %v619_v0 = vand.u32 4294901760, %v2591_v39  ;;  %v607_v1 = vand.u32 4294901760, %v606_v57  ;;  %v1700_v16 = vpack.c.bf16 %v2393_v33, %v2391_v32 }
  0x98   : > { %1689 = vmatpush3.bf16.msra.mxu1 %v1688_v34  ;;  %v626_v10 = vand.u32 4294901760, %v2602_v48  ;;  %v1691_v11 = vpack.c.bf16 %v600_v62, %v593_v54  ;;  %v614_v20 = vand.u32 4294901760, %v613_v6  ;;  %v1703_v45 = vpack.c.bf16 %v2404_v38, %v2402_v37 }
  0x99   : > { %1690 = vmatprep.subr.bf16.mxu1 %v2063_v3  ;;  %v512_v15 = vand.u32 4294901760, %v511_v63  ;;  %v620_v18 = vsub.f32 %v2591_v39, %v619_v0  ;;  %v1706_v57 = vpack.c.bf16 %v2418_v44, %v2416_v43  ;;  %v1709_v62 = vpack.c.bf16 %v2448_v51, %v2446_v50 }
  0x9a   : > { %1674 = vmatpush3.bf16.msk.msra.mxu0 %vm2598_vm15, %v2066_v31  ;;  %v627_v34 = vsub.f32 %v2602_v48, %v626_v10  ;;  %v1694_v35 = vpack.c.bf16 %v614_v20, %v607_v1  ;;  %v1712_v63 = vpack.c.bf16 %v2497_v22, %v2495_v21  ;;  %v1715_v1 = vpack.c.bf16 %v2529_v47, %v2518_v40  ;;  %v425_v21 = vld [vmem:[#allocation2] sm:$0xf] }
  0x9b   : > { %1699 = vmatprep.subr.bf16.mxu0 %v2063_v3  ;;  %v621_v4 = vand.u32 4294901760, %v620_v18  ;;  %v1718_v6 = vpack.c.bf16 %v2562_v14, %v2560_v12  ;;  %v1754_v32 = vpack.c.bf16 %v556_v61, %v549_v60  ;;  %v1757_v33 = vpack.c.bf16 %v570_v27, %v563_v26  ;;  %v1075_v27 = vld [vmem:[%s2875_s13] sm:$0xf] (!%p1335_p7)  ;;  %v1076_v40 = vld [vmem:[%s321_s4] sm:$0x1] (!%p1335_p7) }
  0x9c   : > { %1692 = vmatpush3.bf16.msra.mxu1 %v1691_v11  ;;  %v628_v5 = vand.u32 4294901760, %v627_v34  ;;  %v1721_v11 = vpack.c.bf16 %v2602_v48, %v2591_v39  ;;  %v1760_v37 = vpack.c.bf16 %v584_v59, %v577_v55  ;;  %v1766_v30 = vpack.c.bf16 %v612_v58, %v605_v29 }
  0x9d   : > { %1474 = vmatmul.mubr.f32.vlgmr.msra.gmra.mrb[0].mxu0 %v512_v15  ;;  %1693 = vmatprep.subr.bf16.mxu1 %v2063_v3  ;;  %v1748_v15 = vpack.c.bf16 %v528_v42, %v521_v41  ;;  %v1769_v36 = vpack.c.bf16 %v626_v10, %v619_v0  ;;  %v1082_v55 = vrot.slane (!%p1335_p7), %v1076_v40, %v375_v13 }
  0x9e   : > { %1701 = vmatpush3.bf16.msra.mxu0 %v1700_v16  ;;  %1543 = vmatprep.mubr.msk.f32.mxu0 %vm2064_vm1, %v2065_v8  ;;  %v1697_v54 = vpack.c.bf16 %v628_v5, %v621_v4  ;;  %v1751_v16 = vpack.c.bf16 %v542_v53, %v535_v52 }
  0x9f   : > { %1702 = vmatprep.subr.bf16.mxu0 %v2063_v3 }
  0xa0   : > { %1695 = vmatpush3.bf16.msra.mxu1 %v1694_v35 }
  0xa1   : > { %1696 = vmatprep.subr.bf16.mxu1 %v2063_v3 }
  0xa2   : > { %1704 = vmatpush3.bf16.msra.mxu0 %v1703_v45 }
  0xa3   : > { %1705 = vmatprep.subr.bf16.mxu0 %v2063_v3 }
  0xa4   : > { %1698 = vmatpush3.bf16.msra.mxu1 %v1697_v54 }
  0xa5   : > { %1723 = vmatprep.subr.bf16.mxu1 %v2063_v3 }
  0xa6   : > { %1707 = vmatpush3.bf16.msra.mxu0 %v1706_v57 }
  0xa7   : > { %1509 = vmatmul.mubr.f32.vlgmr.msra.gmra.mrb[0].mxu1 %v2355_v9  ;;  %1708 = vmatprep.subr.bf16.mxu0 %v2063_v3 }
  0xa8   : > { %1725 = vmatpush3.bf16.msk.msra.mxu1 %vm2382_vm5, %v2066_v31  ;;  %1578 = vmatprep.mubr.msk.f32.mxu1 %vm2064_vm1, %v2065_v8 }
  0xa9   : > { %1726 = vmatprep.subr.bf16.mxu1 %v2063_v3 }
  0xaa   : > { %1710 = vmatpush3.bf16.msra.mxu0 %v1709_v62 }
  0xab   : > { %1711 = vmatprep.subr.bf16.mxu0 %v2063_v3 }
  0xac   : > { %1728 = vmatpush3.bf16.msk.msra.mxu1 %vm2398_vm8, %v2066_v31 }
  0xad   : > { %1729 = vmatprep.subr.bf16.mxu1 %v2063_v3 }
  0xae   : > { %1713 = vmatpush3.bf16.msra.mxu0 %v1712_v63 }
  0xaf   : > { %1714 = vmatprep.subr.bf16.mxu0 %v2063_v3 }
  0xb0   : > { %1731 = vmatpush3.bf16.msk.msra.mxu1 %vm2442_vm13, %v2066_v31 }
  0xb1   : > { %1732 = vmatprep.subr.bf16.mxu1 %v2063_v3 }
  0xb2   : > { %1716 = vmatpush3.bf16.msra.mxu0 %v1715_v1 }
  0xb3   : > { %1717 = vmatprep.subr.bf16.mxu0 %v2063_v3 }
  0xb4   : > { %1734 = vmatpush3.bf16.msk.msra.mxu1 %vm2473_vm14, %v2066_v31 }
  0xb5   : > { %1735 = vmatprep.subr.bf16.mxu1 %v2063_v3 }
  0xb6   : > { %1719 = vmatpush3.bf16.msra.mxu0 %v1718_v6 }
  0xb7   : > { %1720 = vmatprep.subr.bf16.mxu0 %v2063_v3 }
  0xb8   : > { %1737 = vmatpush3.bf16.msk.msra.mxu1 %vm2503_vm2, %v2066_v31 }
  0xb9   : > { %1738 = vmatprep.subr.bf16.mxu1 %v2063_v3 }
  0xba   : > { %1722 = vmatpush3.bf16.msra.mxu0 %v1721_v11 }
  0xbb   : > { %1747 = vmatprep.subr.bf16.mxu0 %v2063_v3 }
  0xbc   : > { %1740 = vmatpush3.bf16.msk.msra.mxu1 %vm2537_vm6, %v2066_v31 }
  0xbd   : > { %1544 = vmatmul.mubr.f32.vlgmr.msra.gmra.mrb[2].mxu0 %v2578_v28  ;;  %1741 = vmatprep.subr.bf16.mxu1 %v2063_v3 }
  0xbe   : > { %1749 = vmatpush3.bf16.msra.mxu0 %v1748_v15  ;;  %1613 = vmatprep.mubr.msk.f32.mxu0 %vm2064_vm1, %v2065_v8 }
  0xbf   : > { %1750 = vmatprep.subr.bf16.mxu0 %v2063_v3 }
  0xc0   : > { %1743 = vmatpush3.bf16.msk.msra.mxu1 %vm2568_vm10, %v2066_v31 }
  0xc1   : > { %1744 = vmatprep.subr.bf16.mxu1 %v2063_v3 }
  0xc2   : > { %1752 = vmatpush3.bf16.msra.mxu0 %v1751_v16 }
  0xc3   : > { %1753 = vmatprep.subr.bf16.mxu0 %v2063_v3 }
  0xc4   : > { %1746 = vmatpush3.bf16.msk.msra.mxu1 %vm2598_vm15, %v2066_v31 }
  0xc5   : > { %1771 = vmatprep.subr.bf16.mxu1 %v2063_v3 }
  0xc6   : > { %1755 = vmatpush3.bf16.msra.mxu0 %v1754_v32 }
  0xc7   : > { %1579 = vmatmul.mubr.f32.vlgmr.msra.gmra.mrb[2].mxu1 %v510_v19  ;;  %1756 = vmatprep.subr.bf16.mxu0 %v2063_v3 }
  0xc8   : > { %1773 = vmatpush3.bf16.msk.msra.mxu1 %vm2382_vm5, %v2066_v31  ;;  %1648 = vmatprep.mubr.msk.f32.mxu1 %vm2064_vm1, %v2065_v8  ;;  %v1763_v8 = vpack.c.bf16 %v598_v24, %v591_v23  ;;  %vm1091_vm5 = vcmask (!%p1335_p7), 1043456  }
  0xc9   : > { %1774 = vmatprep.subr.bf16.mxu1 %v2063_v3 }
  0xca   : > { %1758 = vmatpush3.bf16.msra.mxu0 %v1757_v33 }
  0xcb   : > { %1759 = vmatprep.subr.bf16.mxu0 %v2063_v3 }
  0xcc   : > { %1776 = vmatpush3.bf16.msk.msra.mxu1 %vm2398_vm8, %v2066_v31  ;;  %vm1105_vm8 = vcmask (!%p1335_p7), 1040384  }
  0xcd   : > { %1777 = vmatprep.subr.bf16.mxu1 %v2063_v3  ;;  %v1106_v28 = vsel (!%p1335_p7), %vm1105_vm8, %v1076_v40, 0.0 }
  0xce   : > { %1761 = vmatpush3.bf16.msra.mxu0 %v1760_v37 }
  0xcf   : > { %1762 = vmatprep.subr.bf16.mxu0 %v2063_v3 }
  0xd0   : > { %1779 = vmatpush3.bf16.msk.msra.mxu1 %vm2442_vm13, %v2066_v31  ;;  %vm1103_vm13 = vcmask (!%p1335_p7), 0  }
  0xd1   : > { %1780 = vmatprep.subr.bf16.mxu1 %v2063_v3 }
  0xd2   : > { %1764 = vmatpush3.bf16.msra.mxu0 %v1763_v8 }
  0xd3   : > { %1765 = vmatprep.subr.bf16.mxu0 %v2063_v3 }
  0xd4   : > { %1782 = vmatpush3.bf16.msk.msra.mxu1 %vm2473_vm14, %v2066_v31 }
  0xd5   : > { %1783 = vmatprep.subr.bf16.mxu1 %v2063_v3 }
  0xd6   : > { %1767 = vmatpush3.bf16.msra.mxu0 %v1766_v30 }
  0xd7   : > { %1768 = vmatprep.subr.bf16.mxu0 %v2063_v3 }
  0xd8   : > { %1785 = vmatpush3.bf16.msk.msra.mxu1 %vm2503_vm2, %v2066_v31 }
  0xd9   : > { %1786 = vmatprep.subr.bf16.mxu1 %v2063_v3 }
  0xda   : > { %1770 = vmatpush3.bf16.msra.mxu0 %v1769_v36 }
  0xdc   : > { %1788 = vmatpush3.bf16.msk.msra.mxu1 %vm2537_vm6, %v2066_v31 }
  0xdd   : > { %1614 = vmatmul.mubr.f32.vlgmr.msra.gmra.mrb[4].mxu0 %v2355_v9  ;;  %1789 = vmatprep.subr.bf16.mxu1 %v2063_v3 }
  0xe0   : > { %1791 = vmatpush3.bf16.msk.msra.mxu1 %vm2568_vm10, %v2066_v31 }
  0xe1   : > { %1792 = vmatprep.subr.bf16.mxu1 %v2063_v3 }
  0xe4   : > { %1794 = vmatpush3.bf16.msk.msra.mxu1 %vm2598_vm15, %v2066_v31 }
  0xe7   : > { %1649 = vmatmul.mubr.f32.vlgmr.msra.gmra.mrb[4].mxu1 %v2355_v9 }
 0x170   : > { %v514_v38 = vpop.f32.mrb[0].mxu0 }
 0x171   : > { %v1475_v41 = vpop.f32.mrb[1].mxu0 }
 0x17a   : > { %v665_v42 = vpop.f32.mrb[0].mxu1 }
 0x17b   : > { %v666_v43 = vadd.f32 %v665_v42, %v514_v38  ;;  %v1510_v44 = vpop.f32.mrb[1].mxu1 }
 0x190   : > { %v769_v49 = vpop.f32.mrb[2].mxu0 }
 0x191   : > { %v770_v50 = vadd.f32 %v769_v49, %v666_v43  ;;  %v1545_v51 = vpop.f32.mrb[3].mxu0 }
 0x19a   : > { %v858_v52 = vpop.f32.mrb[2].mxu1 }
 0x19b   : > { %v859_v53 = vadd.f32 %v858_v52, %v770_v50  ;;  %v1580_v60 = vpop.f32.mrb[3].mxu1 }
 0x1b0   : > { %v977_v61 = vpop.f32.mrb[4].mxu0 }
 0x1b1   : > { %v978_v2 = vadd.f32 %v977_v61, %v859_v53  ;;  %v1615_v3 = vpop.f32.mrb[5].mxu0 }
 0x1b9   : > { %1073 = sbr.rel (%p1335_p7) target bundleno = 677 (0x2a5), region = 52 }
 0x1ba   : > { %v1064_v22 = vpop.f32.mrb[4].mxu1 }
 0x1bb   : > { %v1065_v25 = vadd.f32 %v1064_v22, %v978_v2  ;;  %v1650_v31 = vpop.f32.mrb[5].mxu1 }
 0x1bd   : > { %v1068_v26 = vadd.f32 %v1065_v25, %v425_v21 }
 0x1bf   : > { %1069 = vst [vmem:[#allocation2] sm:$0xf] %v1068_v26 }
 0x1c6   : > { %v1074_v9 = vld [vmem:[#allocation2] sm:$0xf] }
 0x1c7   : > { %v1077_v47 = vsub.f32 %v1074_v9, %v1075_v27 }
 0x1c9   : > { %v1084_v56 = vmul.f32 %v1082_v55, %v1077_v47 }
 0x1cb   : > { %v1085_v59 = vand.u32 2147483647, %v1084_v56  ;;  %v1087_v12 = vmul.f32 0.5, %v1084_v56 }
 0x1cd   : > { %vm1086_vm1 = vcmp.lt.f32.partialorder %v1085_v59, 1.0  ;;  %v1088_v14 = vmul.f32 %v1087_v12, %v1084_v56  ;;  %v1336_v17 = vadd.f32 -0.5, %v1085_v59 }
 0x1cf   : > { %v1090_v23 = vsel %vm1086_vm1, %v1088_v14, %v1336_v17 }
 0x1d0   : > { %v1092_v24 = vsel %vm1091_vm5, %v1090_v23, 0.0 }
 0x1d1   : > { %1093 = vadd.xlane.f32.xlu0 %v1092_v24 }
 0x1d5   : > { %1107 = vadd.xlane.f32.xlu0 %v1106_v28 }
 0x25e   : > { %v1094_v29 = vpop.xlane.xlu0 %1093 }
 0x25f   : > { %v1095_v39 = vrot.slane %v1094_v29, 4 }
 0x261   : > { %v1096_v19 = vadd.f32 %v1095_v39, %v1094_v29 }
 0x262   : > { %v1108_v46 = vpop.xlane.xlu0 %1107 }
 0x263   : > { %v1097_v7 = vrot.slane %v1096_v19, 2  ;;  %v1109_v13 = vrot.slane %v1108_v46, 4 }
 0x265   : > { %v1110_v48 = vadd.f32 %v1109_v13, %v1108_v46  ;;  %v1098_v58 = vadd.f32 %v1097_v7, %v1096_v19 }
 0x267   : > { %v1111_v0 = vrot.slane %v1110_v48, 2  ;;  %v1099_v10 = vrot.slane %v1098_v58, 1 }
 0x269   : > { %v1112_v18 = vadd.f32 %v1111_v0, %v1110_v48  ;;  %v1100_v20 = vadd.f32 %v1099_v10, %v1098_v58 }
 0x26b   : > { %1795 = vpush %v1100_v20  ;;  %v1113_v34 = vrot.slane %v1112_v18, 1 }
 0x26d   : > { %v1114_v4 = vadd.f32 %v1113_v34, %v1112_v18 }
 0x26f   : > { %1797 = vpush %v1114_v4 }
 0x29c   : > { %s1796_s15 = spop %1795 }
 0x29d   : > { %v1102_v35 = vstv %s1796_s15 }
 0x29e   : > { %1104 = vst.msk [vmem:[%s324_s17] sm:$0x1] %vm1103_vm13, %v1102_v35 }
 0x2a0   : > { %s1798_s8 = spop %1797 }
 0x2a1   : > { %s1116_s9 = smul.f32 4.0, %s1798_s8 }
 0x2a3   : > { %v1117_v5 = vstv %s1116_s9 }
 0x2a4   : > { %1118 = vst.msk [vmem:[%s327_s7] sm:$0x1] %vm1103_vm13, %v1117_v5 }
 0x2a5 PF: > { %s22_s28 = sadd.s32 1, %s2058_s28   ;;  %s2878_s17 = sld [smem:[#allocation10_spill]] }
 0x2a6   : > { %p19_p1 = scmp.ge.s32.totalorder %s22_s28, 6   ;;  %s2879_s11 = sld [smem:[#allocation11_spill]] }
 0x2a7   : > { %s2880_s18 = smov %s2022_s19  ;;  %s2881_s19 = smov %s2026_s20 }
 0x2a8   : > { %s2882_s20 = smov %s2250_s5  ;;  %s2883_s21 = smov %s2034_s22 }
 0x2a9   : > { %s2884_s22 = smov %s2038_s23  ;;  %s2885_s23 = smov %s2190_s16 }
 0x2aa   : > { %s2886_s24 = smov %s2050_s26  ;;  %s2887_s25 = smov %s2054_s27 }
 0x2ab   : > { %s2888_s26 = smov %s2878_s17  ;;  %21 = sbr.rel (!%p19_p1) target bundleno = 12 (0xc), region = 115 }
 0x2ac   : > { %s2889_s27 = smov %s2879_s11 }
 0x2b2   :  { %1148 = vsyncpa [#allocation4], 1 }
 0x2b3   :  { %1150 = vsyncpa [#allocation4 + $0x1], 1 }
 0x2b4   :  { %1151 = vsyncpa [#allocation6], 1 }
 0x2b5   :  { %1153 = vsyncpa [#allocation6 + $0x1], 1 }

</bundles_post_ra>
